<compile_context>
chip_gen: v7x
topology: tpu7x:2x2x1
jax: 0.10.0
libtpu: 0.0.40
codegen_flags: <defaults>
</compile_context>

<pallas_src>
import functools

import numpy as np
import jax
import jax.numpy as jnp
from jax import lax
from jax.experimental import pallas as pl
from jax.experimental.pallas import tpu as pltpu


def _round_up(n, m):
    return ((n + m - 1) // m) * m


# ---------------------------------------------------------------------------
# In-kernel helpers
# ---------------------------------------------------------------------------

def _chunk_slice(w_ref, c, nc):
    start = c * nc
    if not isinstance(start, int):
        start = pl.multiple_of(start, nc)
    return w_ref[pl.ds(start, nc), :], start


def _chunked_argmin(x_ref, w_ref, *, n, nc, score_dtype):
    """Running argmin_i of (W @ x.T)[i, b] over codebook chunks.

    Returns a (1, TB) int32 slab == torch.argmin(dist.T, dim=1) (first-index
    tie behaviour).  Scores use `score_dtype` MXU operands with f32
    accumulation; the running state is two (1, TB) vregs, so no (N, TB)
    temporaries are ever materialised (indices stay int32 end to end).
    """
    tb = x_ref.shape[0]
    n_pad = w_ref.shape[0]
    num_chunks = n_pad // nc
    xt = x_ref[...].astype(score_dtype)                                # (TB, D)

    def body(c, carry):
        min_val, best_ix = carry
        wc, start = _chunk_slice(w_ref, c, nc)                         # (nc, D)
        scores = lax.dot_general(wc.astype(score_dtype), xt,
                                 (((1,), (1,)), ((), ())),
                                 preferred_element_type=jnp.float32)   # (nc, TB)
        rows = start + lax.broadcasted_iota(jnp.int32, (nc, tb), 0)
        if n_pad != n:                                                 # mask codebook padding
            scores = jnp.where(rows < n, scores, jnp.inf)
        cmin = jnp.min(scores, axis=0, keepdims=True)                  # sublane reduce
        cix = jnp.min(jnp.where(scores == cmin, rows, n), axis=0, keepdims=True)
        better = cmin < min_val                                        # strict: keep first index
        return jnp.where(better, cmin, min_val), jnp.where(better, cix, best_ix)

    init = (jnp.full((1, tb), jnp.inf, jnp.float32),
            jnp.zeros((1, tb), jnp.int32))
    if num_chunks == 1:
        _, best_ix = body(0, init)
    else:
        _, best_ix = lax.fori_loop(0, num_chunks, body, init)
    return best_ix


# ---------------------------------------------------------------------------
# Kernels
# ---------------------------------------------------------------------------

def _vq_index_kernel(x_ref, w_ref, ix_ref, *, n, nc, score_dtype):
    """Eval + return_index path: lane-dense (1, TB) int32 argmin output."""
    ix_ref[...] = _chunked_argmin(x_ref, w_ref, n=n, nc=nc, score_dtype=score_dtype)


def _vq_value_kernel(x_ref, w_ref, out_ref, *, n, nc, training, k, score_dtype,
                     lane_dense):
    """Per batch tile: chunked argmin, then chunked gather (eval) / wknn mix."""
    tb, d = x_ref.shape
    n_pad = w_ref.shape[0]
    num_chunks = n_pad // nc
    w_dtype = w_ref.dtype

    best_ix = _chunked_argmin(x_ref, w_ref, n=n, nc=nc, score_dtype=score_dtype)  # (1, TB)

    if training:
        # wknn window [low, up] (same clamping as the PyTorch helper).  The
        # gaussian normaliser is built from trace-time constants and applied as
        # an exact divide (review: the approx EUP reciprocal bought nothing on
        # a (1, TB) tensor).
        low = jnp.where(best_ix < k, 0, best_ix - k)
        up = jnp.where(best_ix < k, best_ix + k - 1,
                       jnp.where(best_ix + k >= n, n - 1, best_ix + k))
        gsum = jnp.zeros((1, tb), jnp.float32)
        for o in range(-k, k + 1):                      # <= 2*knn+1 static iterations
            j = best_ix + o
            gsum = gsum + jnp.where((j >= low) & (j <= up),
                                    float(np.exp(-0.5 * o * o)), 0.0)
        inv_g = 1.0 / gsum                              # exact divide

    acc_shape = (d, tb) if lane_dense else (tb, d)

    def body(c, acc):
        wc, start = _chunk_slice(w_ref, c, nc)                          # (nc, D)
        rows = start + lax.broadcasted_iota(jnp.int32, (nc, tb), 0)     # (nc, TB)
        if training:
            mask = (rows >= low) & (rows <= up)
            dist = (rows - best_ix).astype(jnp.float32)
            sel = jnp.where(mask, jnp.exp(-0.5 * dist * dist), 0.0) * inv_g
            sel = sel.astype(w_dtype)
        else:
            # one-hot gather of embedding(ix); exact for 0/1 in any dtype
            sel = (rows == best_ix).astype(w_dtype)
        if lane_dense:
            upd = lax.dot_general(wc, sel, (((0,), (0,)), ((), ())),
                                  preferred_element_type=jnp.float32)   # (D, TB)
        else:
            upd = lax.dot_general(sel, wc, (((0,), (0,)), ((), ())),
                                  preferred_element_type=jnp.float32)   # (TB, D)
        return acc + upd

    acc = jnp.zeros(acc_shape, jnp.float32)
    if num_chunks == 1:
        acc = body(0, acc)
    else:
        acc = lax.fori_loop(0, num_chunks, body, acc)
    out_ref[...] = acc.astype(out_ref.dtype)


# ---------------------------------------------------------------------------
# Wrapper
# ---------------------------------------------------------------------------

def _call_quantizer_kernel(kernel, *, grid, x_spec, w_block, out_specs, out_shape,
                           cparams, x, w_dev):
    """pallas_call with a single-buffered resident-W BlockSpec.

    The constant index_map already means W is DMA'd only once, but the default
    pipeline still allocates two W buffers; pl.Buffered(1) halves that VMEM
    cost.  Falls back to the default double-buffered spec if this JAX build
    rejects pipeline_mode on pallas_call inputs.
    """
    specs = (pl.BlockSpec(w_block, lambda i: (0, 0), pipeline_mode=pl.Buffered(1)),
             pl.BlockSpec(w_block, lambda i: (0, 0)))
    for idx, w_spec in enumerate(specs):
        try:
            return pl.pallas_call(
                kernel, grid=grid,
                in_specs=[x_spec, w_spec],
                out_specs=out_specs, out_shape=out_shape,
                compiler_params=cparams,
            )(x, w_dev)
        except Exception:                      # retry with default double-buffered W
            if idx == len(specs) - 1:
                raise


def vector_quantizer_forward(x, w, *, training=False, epoch=0, epochs=1, knn=20,
                             return_index=False, block_b=256, codebook_chunk=512,
                             score_dtype=jnp.bfloat16):
    """Forward pass of VectorQuantizer.

    x: (batch, embed_dim); w: (num_vectors, embed_dim) -- the nn.Embedding
    weight.  `score_dtype` controls the MXU operand dtype of the score matmul
    (bf16 default; pass jnp.float32 for bit-level argmin parity on near-ties).
    """
    B, D = x.shape
    N, Dw = w.shape
    assert D == Dw, "x and embedding dims disagree"

    k = knn - int(knn * (epoch / epochs))       # same schedule as the PyTorch module
    if training:
        assert N > 2 * k, "wknn window assumes num_vectors > 2*k (as in the module)"

    # ---- batch tiling -------------------------------------------------------
    # Lane-oriented outputs ((1, B) index slab / (D, B) value slab) need the
    # tile's lane dim to be a multiple of 128 unless it covers the whole batch,
    # so tiles are 128-aligned whenever we split.  Splitting into >= 2 tiles
    # lets dimension_semantics=("parallel",) shard across v7x's two cores.  No
    # wrapper-side padding of x: the ragged last tile uses Pallas OOB semantics
    # (garbage reads feed only rows whose writes are discarded).
    block_b = max(128, (block_b // 128) * 128)
    if B <= 128:
        tb = B
    else:
        tb = min(block_b, _round_up((B + 1) // 2, 128))
    grid = (pl.cdiv(B, tb),)

    # ---- codebook chunking / padding ---------------------------------------
    nc = min(_round_up(codebook_chunk, 8), _round_up(N, 8))
    n_pad = _round_up(N, nc)
    w_dev = w if n_pad == N else jnp.pad(w, ((0, n_pad - N), (0, 0)))

    x_spec = pl.BlockSpec((tb, D), lambda i: (i, 0))      # pipelined batch tiles
    w_block = (n_pad, D)                                  # resident codebook

    # ---- VMEM budget --------------------------------------------------------
    est = (2 * n_pad * D * w.dtype.itemsize               # W (worst case: 2 buffers)
           + 4 * tb * D * 4                               # x / out double buffers
           + 8 * nc * tb * 4                              # per-chunk temporaries
           + tb * D * 4)                                  # loop accumulator
    vmem_limit = int(max(32 << 20, min(64 << 20, est + (8 << 20))))
    cparams = pltpu.CompilerParams(dimension_semantics=("parallel",),
                                   vmem_limit_bytes=vmem_limit)

    if (not training) and return_index:
        # TODO(synk): self.statistics (host-side Python dict histogram of the
        # selected codes in eval mode) has no device-side equivalent; callers
        # can histogram the returned indices instead.
        kernel = functools.partial(_vq_index_kernel, n=N, nc=nc,
                                   score_dtype=score_dtype)
        ix = _call_quantizer_kernel(
            kernel, grid=grid, x_spec=x_spec, w_block=w_block,
            out_specs=pl.BlockSpec((1, tb), lambda i: (0, i)),   # lane-dense int32
            out_shape=jax.ShapeDtypeStruct((1, B), jnp.int32),
            cparams=cparams, x=x, w_dev=w_dev)
        return ix[0]

    lane_dense = D < 128    # (D, B) slab -> unmasked 128-lane stores; transpose outside
    kernel = functools.partial(_vq_value_kernel, n=N, nc=nc, training=training, k=k,
                               score_dtype=score_dtype, lane_dense=lane_dense)
    if lane_dense:
        out_specs = pl.BlockSpec((D, tb), lambda i: (0, i))
        out_shape = jax.ShapeDtypeStruct((D, B), w.dtype)
    else:
        out_specs = pl.BlockSpec((tb, D), lambda i: (i, 0))
        out_shape = jax.ShapeDtypeStruct((B, D), w.dtype)
    out = _call_quantizer_kernel(
        kernel, grid=grid, x_spec=x_spec, w_block=w_block,
        out_specs=out_specs, out_shape=out_shape,
        cparams=cparams, x=x, w_dev=w_dev)
    return out.T if lane_dense else out


def make_embedding_weight(num_vectors, embed_dim):
    # torch.linspace(-1, 1, num_vectors).repeat(embed_dim, 1).T -> (num_vectors, embed_dim)
    return jnp.tile(jnp.linspace(-1.0, 1.0, num_vectors, dtype=jnp.float32)[:, None],
                    (1, embed_dim))


# ---------------------------------------------------------------------------
# Pure numpy reference (mirrors the PyTorch forward) for validation
# ---------------------------------------------------------------------------

def _ref_forward(x, w, *, training=False, epoch=0, epochs=1, knn=20,
                 return_index=False):
    xn = np.asarray(x, dtype=np.float32)
    wn = np.asarray(w, dtype=np.float32)
    N = wn.shape[0]
    scores = xn @ wn.T                      # == (W @ x.T).T
    ix = np.argmin(scores, axis=1)
    if training:
        k = knn - int(knn * (epoch / epochs))
        outs = []
        for b in range(xn.shape[0]):
            i = int(ix[b])
            if i - k < 0:
                v = np.arange(0, i + k)
            elif i + k >= N:
                v = np.arange(i - k, N)
            else:
                v = np.arange(i - k, i + k + 1)
            d = (v - i).astype(np.float32)
            g = np.exp(-0.5 * d * d)
            wt = g / g.sum()
            outs.append((wn[v] * wt[:, None]).sum(axis=0))
        return np.stack(outs).astype(np.float32)
    if return_index:
        return ix
    return wn[ix]


if __name__ == "__main__":
    key = jax.random.PRNGKey(0)
    kx1, kx2, kx3, kw = jax.random.split(key, 4)

    # --- config 1: module-default codebook, single batch tile ----------------
    N1, D1, B1 = 64, 32, 8            # num_vectors > 2*knn keeps wknn windows valid
    w1 = make_embedding_weight(N1, D1)
    x1 = jax.random.normal(kx1, (B1, D1), jnp.float32)

    out_eval = vector_quantizer_forward(x1, w1, training=False, score_dtype=jnp.float32)
    idx = vector_quantizer_forward(x1, w1, training=False, return_index=True,
                                   score_dtype=jnp.float32)
    out_trn = vector_quantizer_forward(x1, w1, training=True, epoch=17, epochs=20,
                                       knn=20, score_dtype=jnp.float32)
    jax.block_until_ready((out_eval, idx, out_trn))
    np.testing.assert_allclose(np.asarray(out_eval), _ref_forward(x1, w1),
                               rtol=1e-5, atol=1e-5)
    assert np.array_equal(np.asarray(idx), _ref_forward(x1, w1, return_index=True))
    np.testing.assert_allclose(np.asarray(out_trn),
                               _ref_forward(x1, w1, training=True, epoch=17,
                                            epochs=20, knn=20),
                               rtol=1e-4, atol=1e-4)

    # --- config 2: multi-tile batch (grid=2, ragged last tile) ---------------
    B2 = 200
    x2 = jax.random.normal(kx2, (B2, D1), jnp.float32)
    out2 = vector_quantizer_forward(x2, w1, training=False, block_b=128,
                                    score_dtype=jnp.float32)
    idx2 = vector_quantizer_forward(x2, w1, training=False, return_index=True,
                                    block_b=128, score_dtype=jnp.float32)
    trn2 = vector_quantizer_forward(x2, w1, training=True, epoch=0, epochs=1, knn=20,
                                    block_b=128, score_dtype=jnp.float32)
    jax.block_until_ready((out2, idx2, trn2))
    np.testing.assert_allclose(np.asarray(out2), _ref_forward(x2, w1),
                               rtol=1e-5, atol=1e-5)
    assert np.array_equal(np.asarray(idx2), _ref_forward(x2, w1, return_index=True))
    np.testing.assert_allclose(np.asarray(trn2),
                               _ref_forward(x2, w1, training=True, epoch=0,
                                            epochs=1, knn=20),
                               rtol=1e-4, atol=1e-4)

    # --- config 3: chunked + zero-padded codebook (fori_loop path) -----------
    N3, D3, B3 = 100, 32, 16
    w3 = jax.random.normal(kw, (N3, D3), jnp.float32)
    x3 = jax.random.normal(kx3, (B3, D3), jnp.float32)
    out3 = vector_quantizer_forward(x3, w3, training=False, codebook_chunk=32,
                                    score_dtype=jnp.float32)
    idx3 = vector_quantizer_forward(x3, w3, training=False, return_index=True,
                                    codebook_chunk=32, score_dtype=jnp.float32)
    trn3 = vector_quantizer_forward(x3, w3, training=True, epoch=5, epochs=10, knn=20,
                                    codebook_chunk=32, score_dtype=jnp.float32)
    jax.block_until_ready((out3, idx3, trn3))
    np.testing.assert_allclose(np.asarray(out3), _ref_forward(x3, w3),
                               rtol=1e-5, atol=1e-5)
    assert np.array_equal(np.asarray(idx3), _ref_forward(x3, w3, return_index=True))
    np.testing.assert_allclose(np.asarray(trn3),
                               _ref_forward(x3, w3, training=True, epoch=5,
                                            epochs=10, knn=20),
                               rtol=1e-4, atol=1e-4)

    # --- config 4: default bf16 score matmul (review item) -------------------
    # bf16 scores can legitimately flip argmin on near-ties vs the f32
    # reference, so validate near-optimality + self-consistency instead of
    # exact index equality.
    idx_bf = vector_quantizer_forward(x2, w1, training=False, return_index=True,
                                      block_b=128)
    out_bf = vector_quantizer_forward(x2, w1, training=False, block_b=128)
    jax.block_until_ready((idx_bf, out_bf))
    scores_np = np.asarray(x2, np.float32) @ np.asarray(w1, np.float32).T
    chosen = scores_np[np.arange(B2), np.asarray(idx_bf)]
    assert np.all(chosen <= scores_np.min(axis=1) + 0.05 * np.abs(scores_np).max())
    np.testing.assert_allclose(np.asarray(out_bf),
                               np.asarray(w1)[np.asarray(idx_bf)],
                               rtol=1e-5, atol=1e-5)

    print("KERNEL_OK")
</pallas_src>

<mosaic_0001>
module attributes {stable_mosaic.version = 11 : i64} {
  func.func @_vq_value_kernel(%arg0: i32, %arg1: memref<8x32xf32, #tpu.memory_space<vmem>>, %arg2: memref<64x32xf32, #tpu.memory_space<vmem>>, %arg3: memref<32x8xf32, #tpu.memory_space<vmem>>) attributes {dimension_semantics = [#tpu.dimension_semantics<parallel>], iteration_bounds = array<i64: 1>, scalar_prefetch = 0 : i64, scratch_operands = 0 : i64, tpu.core_type = #tpu.core_type<tc>, window_params = [{transform_indices = @transform_0, window_bounds = array<i64: 8, 32>}, {pipeline_mode = #tpu.pipeline_mode<synchronous>, transform_indices = @transform_1, window_bounds = array<i64: 64, 32>}, {transform_indices = @transform_2, window_bounds = array<i64: 32, 8>}]} {
    %c0 = arith.constant 0 : index
    %c0_0 = arith.constant 0 : index
    %0 = vector.load %arg1[%c0, %c0_0] : memref<8x32xf32, #tpu.memory_space<vmem>>, vector<8x32xf32>
    %cst = arith.constant 0x7F800000 : f32
    %1 = vector.broadcast %cst : f32 to vector<1x8xf32>
    %c0_i32 = arith.constant 0 : i32
    %2 = vector.broadcast %c0_i32 : i32 to vector<1x8xi32>
    %c0_1 = arith.constant 0 : index
    %c0_2 = arith.constant 0 : index
    %3 = vector.load %arg2[%c0_1, %c0_2] : memref<64x32xf32, #tpu.memory_space<vmem>>, vector<64x32xf32>
    %cst_3 = arith.constant dense<0.000000e+00> : vector<64x8xf32>
    %4 = tpu.matmul %3, %0, %cst_3 {dimension_numbers = #tpu.dot_dimension_numbers<[1], [1], [0], [0], [0, 0, 1, 0], [], []>} : vector<64x32xf32>, vector<8x32xf32>, vector<64x8xf32> -> vector<64x8xf32>
    %5 = tpu.iota {dimensions = array<i32: 0>} : vector<64x8xi32>
    %c0_i32_4 = arith.constant 0 : i32
    %6 = vector.broadcast %c0_i32_4 : i32 to vector<64x8xi32>
    %7 = arith.addi %6, %5 : vector<64x8xi32>
    %cst_5 = arith.constant dense<0x7F800000> : vector<8xf32>
    %8 = vector.multi_reduction <minimumf>, %4, %cst_5 [0] : vector<64x8xf32> to vector<8xf32>
    %9 = vector.shape_cast %8 : vector<8xf32> to vector<1x8xf32>
    %10 = vector.broadcast %9 : vector<1x8xf32> to vector<64x8xf32>
    %11 = arith.cmpf oeq, %4, %10 : vector<64x8xf32>
    %c64_i32 = arith.constant 64 : i32
    %12 = vector.broadcast %c64_i32 : i32 to vector<64x8xi32>
    %13 = arith.select %11, %7, %12 : vector<64x8xi1>, vector<64x8xi32>
    %cst_6 = arith.constant dense<2147483647> : vector<8xi32>
    %14 = vector.multi_reduction <minsi>, %13, %cst_6 [0] : vector<64x8xi32> to vector<8xi32>
    %15 = vector.shape_cast %14 : vector<8xi32> to vector<1x8xi32>
    %16 = arith.cmpf olt, %9, %1 : vector<1x8xf32>
    %17 = arith.select %16, %15, %2 : vector<1x8xi1>, vector<1x8xi32>
    %cst_7 = arith.constant 0.000000e+00 : f32
    %18 = vector.broadcast %cst_7 : f32 to vector<32x8xf32>
    %c0_8 = arith.constant 0 : index
    %c0_9 = arith.constant 0 : index
    %19 = vector.load %arg2[%c0_8, %c0_9] : memref<64x32xf32, #tpu.memory_space<vmem>>, vector<64x32xf32>
    %20 = tpu.iota {dimensions = array<i32: 0>} : vector<64x8xi32>
    %c0_i32_10 = arith.constant 0 : i32
    %21 = vector.broadcast %c0_i32_10 : i32 to vector<64x8xi32>
    %22 = arith.addi %21, %20 : vector<64x8xi32>
    %23 = vector.broadcast %17 : vector<1x8xi32> to vector<64x8xi32>
    %24 = arith.cmpi eq, %22, %23 : vector<64x8xi32>
    %25 = arith.extui %24 : vector<64x8xi1> to vector<64x8xi32>
    %26 = arith.sitofp %25 : vector<64x8xi32> to vector<64x8xf32>
    %cst_11 = arith.constant dense<0.000000e+00> : vector<32x8xf32>
    %27 = tpu.matmul %19, %26, %cst_11 {dimension_numbers = #tpu.dot_dimension_numbers<[0], [0], [1], [1], [0, 1, 1, 1], [], []>} : vector<64x32xf32>, vector<64x8xf32>, vector<32x8xf32> -> vector<32x8xf32>
    %28 = arith.addf %18, %27 : vector<32x8xf32>
    %c0_12 = arith.constant 0 : index
    %c0_13 = arith.constant 0 : index
    %29 = vector.load %arg3[%c0_12, %c0_13] : memref<32x8xf32, #tpu.memory_space<vmem>>, vector<32x8xf32>
    tpu.vector_store %arg3[%c0_12, %c0_13], %28 {strides = array<i32>} : memref<32x8xf32, #tpu.memory_space<vmem>>, vector<32x8xf32>,
    return
  }
  func.func @transform_0(%arg0: i32) -> (i32, i32) {
    %c0_i32 = arith.constant 0 : i32
    %c0_i32_0 = arith.constant 0 : i32
    return %arg0, %c0_i32 : i32, i32
  }
  func.func @transform_1(%arg0: i32) -> (i32, i32) {
    %c0_i32 = arith.constant 0 : i32
    %c0_i32_0 = arith.constant 0 : i32
    %c0_i32_1 = arith.constant 0 : i32
    return %c0_i32, %c0_i32_0 : i32, i32
  }
  func.func @transform_2(%arg0: i32) -> (i32, i32) {
    %c0_i32 = arith.constant 0 : i32
    %c0_i32_0 = arith.constant 0 : i32
    return %c0_i32, %arg0 : i32, i32
  }
}

module attributes {stable_mosaic.version = 11 : i64} {
  func.func @_vq_value_kernel(%arg0: i32, %arg1: memref<8x32xf32, #tpu.memory_space<vmem>>, %arg2: memref<64x32xf32, #tpu.memory_space<vmem>>, %arg3: memref<32x8xf32, #tpu.memory_space<vmem>>) attributes {dimension_semantics = [#tpu.dimension_semantics<parallel>], iteration_bounds = array<i64: 1>, scalar_prefetch = 0 : i64, scratch_operands = 0 : i64, tpu.core_type = #tpu.core_type<tc>, window_params = [{transform_indices = @transform_0, window_bounds = array<i64: 8, 32>}, {pipeline_mode = #tpu.pipeline_mode<synchronous>, transform_indices = @transform_1, window_bounds = array<i64: 64, 32>}, {transform_indices = @transform_2, window_bounds = array<i64: 32, 8>}]} {
    %c0 = arith.constant 0 : index
    %c0_0 = arith.constant 0 : index
    %0 = vector.load %arg1[%c0, %c0_0] : memref<8x32xf32, #tpu.memory_space<vmem>>, vector<8x32xf32>
    %cst = arith.constant 0x7F800000 : f32
    %1 = vector.broadcast %cst : f32 to vector<1x8xf32>
    %c0_i32 = arith.constant 0 : i32
    %2 = vector.broadcast %c0_i32 : i32 to vector<1x8xi32>
    %c0_1 = arith.constant 0 : index
    %c0_2 = arith.constant 0 : index
    %3 = vector.load %arg2[%c0_1, %c0_2] : memref<64x32xf32, #tpu.memory_space<vmem>>, vector<64x32xf32>
    %cst_3 = arith.constant dense<0.000000e+00> : vector<64x8xf32>
    %4 = tpu.matmul %3, %0, %cst_3 {dimension_numbers = #tpu.dot_dimension_numbers<[1], [1], [0], [0], [0, 0, 1, 0], [], []>} : vector<64x32xf32>, vector<8x32xf32>, vector<64x8xf32> -> vector<64x8xf32>
    %5 = tpu.iota {dimensions = array<i32: 0>} : vector<64x8xi32>
    %c0_i32_4 = arith.constant 0 : i32
    %6 = vector.broadcast %c0_i32_4 : i32 to vector<64x8xi32>
    %7 = arith.addi %6, %5 : vector<64x8xi32>
    %cst_5 = arith.constant dense<0x7F800000> : vector<8xf32>
    %8 = vector.multi_reduction <minimumf>, %4, %cst_5 [0] : vector<64x8xf32> to vector<8xf32>
    %9 = vector.shape_cast %8 : vector<8xf32> to vector<1x8xf32>
    %10 = vector.broadcast %9 : vector<1x8xf32> to vector<64x8xf32>
    %11 = arith.cmpf oeq, %4, %10 : vector<64x8xf32>
    %c64_i32 = arith.constant 64 : i32
    %12 = vector.broadcast %c64_i32 : i32 to vector<64x8xi32>
    %13 = arith.select %11, %7, %12 : vector<64x8xi1>, vector<64x8xi32>
    %cst_6 = arith.constant dense<2147483647> : vector<8xi32>
    %14 = vector.multi_reduction <minsi>, %13, %cst_6 [0] : vector<64x8xi32> to vector<8xi32>
    %15 = vector.shape_cast %14 : vector<8xi32> to vector<1x8xi32>
    %16 = arith.cmpf olt, %9, %1 : vector<1x8xf32>
    %17 = arith.select %16, %15, %2 : vector<1x8xi1>, vector<1x8xi32>
    %cst_7 = arith.constant 0.000000e+00 : f32
    %18 = vector.broadcast %cst_7 : f32 to vector<32x8xf32>
    %c0_8 = arith.constant 0 : index
    %c0_9 = arith.constant 0 : index
    %19 = vector.load %arg2[%c0_8, %c0_9] : memref<64x32xf32, #tpu.memory_space<vmem>>, vector<64x32xf32>
    %20 = tpu.iota {dimensions = array<i32: 0>} : vector<64x8xi32>
    %c0_i32_10 = arith.constant 0 : i32
    %21 = vector.broadcast %c0_i32_10 : i32 to vector<64x8xi32>
    %22 = arith.addi %21, %20 : vector<64x8xi32>
    %23 = vector.broadcast %17 : vector<1x8xi32> to vector<64x8xi32>
    %24 = arith.cmpi eq, %22, %23 : vector<64x8xi32>
    %25 = arith.extui %24 : vector<64x8xi1> to vector<64x8xi32>
    %26 = arith.sitofp %25 : vector<64x8xi32> to vector<64x8xf32>
    %cst_11 = arith.constant dense<0.000000e+00> : vector<32x8xf32>
    %27 = tpu.matmul %19, %26, %cst_11 {dimension_numbers = #tpu.dot_dimension_numbers<[0], [0], [1], [1], [0, 1, 1, 1], [], []>} : vector<64x32xf32>, vector<64x8xf32>, vector<32x8xf32> -> vector<32x8xf32>
    %28 = arith.addf %18, %27 : vector<32x8xf32>
    %c0_12 = arith.constant 0 : index
    %c0_13 = arith.constant 0 : index
    %29 = vector.load %arg3[%c0_12, %c0_13] : memref<32x8xf32, #tpu.memory_space<vmem>>, vector<32x8xf32>
    tpu.vector_store %arg3[%c0_12, %c0_13], %28 {strides = array<i32>} : memref<32x8xf32, #tpu.memory_space<vmem>>, vector<32x8xf32>,
    return
  }
  func.func @transform_0(%arg0: i32) -> (i32, i32) {
    %c0_i32 = arith.constant 0 : i32
    %c0_i32_0 = arith.constant 0 : i32
    return %arg0, %c0_i32 : i32, i32
  }
  func.func @transform_1(%arg0: i32) -> (i32, i32) {
    %c0_i32 = arith.constant 0 : i32
    %c0_i32_0 = arith.constant 0 : i32
    %c0_i32_1 = arith.constant 0 : i32
    return %c0_i32, %c0_i32_0 : i32, i32
  }
  func.func @transform_2(%arg0: i32) -> (i32, i32) {
    %c0_i32 = arith.constant 0 : i32
    %c0_i32_0 = arith.constant 0 : i32
    return %c0_i32, %arg0 : i32, i32
  }
}

</mosaic_0001>

<bundles_post_ra>
// kernel: tpu_custom_call.1
= control target key start
LH: loop header
LB: loop body
LE: loop exit
PB: predicated region body
PF: predicated region fallthrough
CT: control target
= control target key end

     0   :  { %vm20_vm0 = vcmask 261120   ;;  %vm289_vm1 = vcmask 523264   ;;  %vm162_vm2 = vcmask 64512   ;;  %v153_v34 = vlaneseq  ;;  %s623_s0 = inlined_call_operand.vmem [shape: f32[8,32], index: 0, kind: input, shape index: {}]   ;;  %s624_s1 = inlined_call_operand.vmem [shape: f32[64,32], index: 1, kind: input, shape index: {}]   ;;  %s625_s2 = inlined_call_operand.vmem [shape: f32[32,8], index: 2, kind: output, shape index: {}]  }
   0x1   :  { %v11_v0 = vld [vmem:[%s623_s0] sm:$0xff]  ;;  %v13_v2 = vld [vmem:[%s624_s1 + $0x8] sm:$0xff]  ;;  %v14_v3 = vld [vmem:[%s624_s1 + $0x10] sm:$0xff] }
   0x2   :  { %v12_v1 = vld [vmem:[%s624_s1] sm:$0xff]  ;;  %445 = vmatprep.subr.msk.mxu0 %vm20_vm0, %v11_v0  ;;  %v15_v4 = vld [vmem:[%s624_s1 + $0x18] sm:$0xff]  ;;  %v17_v6 = vld [vmem:[%s624_s1 + $0x28] sm:$0xff]  ;;  %v561_v37 = vshrl.u32 %v153_v34, 7 }
   0x3   :  { %447 = vmatprep.mubr.msk.f32.mxu0 %vm20_vm0, %v12_v1  ;;  %446 = vmatpush3.xpose.msk.msra.mxu0 %vm20_vm0, %v11_v0  ;;  %v16_v5 = vld [vmem:[%s624_s1 + $0x20] sm:$0xff]  ;;  %v18_v7 = vld [vmem:[%s624_s1 + $0x30] sm:$0xff]  ;;  %v19_v8 = vld [vmem:[%s624_s1 + $0x38] sm:$0xff] }
   0x4   :  { %257 = vxpose.xlu0.b32.start [1/8] (short) (narrow) %v12_v1, 32  ;;  %v564_v40 = vadd.s32 16, %v561_v37  ;;  %v567_v41 = vadd.s32 24, %v561_v37  ;;  %v570_v42 = vadd.s32 48, %v561_v37  ;;  %v573_v43 = vadd.s32 56, %v561_v37 }
   0x5   :  { %v155_v45 = vadd.s32 8, %v561_v37  ;;  %v577_v46 = vadd.s32 32, %v561_v37  ;;  %v580_v47 = vadd.s32 40, %v561_v37 }
   0x6   :  { %448 = vmatmul.mubr.msk.f32.vlgmr.msra.gmra.mrb[0].mxu0 %vm20_vm0, %v13_v2 }
   0x7   :  { %450 = vmatprep.mubr.msk.f32.mxu0 %vm20_vm0, %v14_v3 }
   0x8   :  { %258 = vxpose.xlu0.b32.cont [2/8] (short) (narrow) %v13_v2, 32 }
   0xa   :  { %451 = vmatmul.mubr.msk.f32.gmra.mrb[2].mxu0 %vm20_vm0, %v15_v4 }
   0xb   :  { %453 = vmatprep.mubr.msk.f32.mxu0 %vm20_vm0, %v16_v5 }
   0xc   :  { %259 = vxpose.xlu0.b32.cont [3/8] (short) (narrow) %v14_v3, 32 }
   0xe   :  { %454 = vmatmul.mubr.msk.f32.gmra.mrb[4].mxu0 %vm20_vm0, %v17_v6 }
   0xf   :  { %456 = vmatprep.mubr.msk.f32.mxu0 %vm20_vm0, %v18_v7 }
  0x10   :  { %260 = vxpose.xlu0.b32.cont [4/8] (short) (narrow) %v15_v4, 32 }
  0x12   :  { %457 = vmatmul.mubr.msk.f32.gmra.mrb[6].mxu0 %vm20_vm0, %v19_v8 }
  0x14   :  { %261 = vxpose.xlu0.b32.cont [5/8] (short) (narrow) %v16_v5, 32 }
  0x18   :  { %262 = vxpose.xlu0.b32.cont [6/8] (short) (narrow) %v17_v6, 32 }
  0x1c   :  { %263 = vxpose.xlu0.b32.cont [7/8] (short) (narrow) %v18_v7, 32 }
  0x20   :  { %264 = vxpose.xlu0.b32.end [8/8] (short) (narrow) %v19_v8, 32 }
  0x84   :  { %v273_v9 = vpop.trf.xlu0 }
  0x85   :  { %475 = vmatprep.mubr.msk.f32.mxu1 %vm289_vm1, %v273_v9 }
  0xd9   :  { %v449_v10 = vpop.f32.mrb[0].mxu0 }
  0xda   :  { %v114_v11 = vpop.f32.mrb[1].mxu0  ;;  %v164_v15 = vsel %vm162_vm2, %v449_v10, inf }
  0xdb   :  { %v163_v18 = vsel %vm162_vm2, %v114_v11, inf }
  0xdd   :  { %v452_v12 = vpop.f32.mrb[2].mxu0 }
  0xde   :  { %v124_v13 = vpop.f32.mrb[3].mxu0  ;;  %v166_v23 = vsel %vm162_vm2, %v452_v12, inf }
  0xdf   :  { %v165_v27 = vsel %vm162_vm2, %v124_v13, inf }
  0xe1   :  { %v455_v14 = vpop.f32.mrb[4].mxu0 }
  0xe2   :  { %v169_v16 = vsel %vm162_vm2, %v455_v14, inf  ;;  %v134_v17 = vpop.f32.mrb[5].mxu0 }
  0xe3   :  { %v170_v19 = vmin.f32 %v164_v15, %v169_v16  ;;  %v167_v20 = vsel %vm162_vm2, %v134_v17, inf  ;;  %v274_v15 = vpop.trf.xlu0 }
  0xe4   :  { %v168_v21 = vmin.f32 %v163_v18, %v167_v20 }
  0xe5   :  { %v458_v22 = vpop.f32.mrb[6].mxu0 }
  0xe6   :  { %v175_v24 = vmin.f32 %v168_v21, %v170_v19  ;;  %v173_v25 = vsel %vm162_vm2, %v458_v22, inf  ;;  %v144_v26 = vpop.f32.mrb[7].mxu0 }
  0xe7   :  { %v174_v28 = vmin.f32 %v166_v23, %v173_v25  ;;  %v171_v29 = vsel %vm162_vm2, %v144_v26, inf  ;;  %v275_v16 = vpop.trf.xlu0 }
  0xe8   :  { %v172_v30 = vmin.f32 %v165_v27, %v171_v29 }
  0xea   :  { %v176_v31 = vmin.f32 %v172_v30, %v174_v28 }
  0xec   :  { %v177_v32 = vmin.f32 %v175_v24, %v176_v31 }
  0xee   :  { %v178_v33 = vrot.slane %v177_v32, 4 }
  0xf0   :  { %v179_v35 = vmin.f32 %v177_v32, %v178_v33 }
  0xf2   :  { %v180_v36 = vrot.slane %v179_v35, 2 }
  0xf4   :  { %v181_v38 = vmin.f32 %v179_v35, %v180_v36 }
  0xf6   :  { %v182_v39 = vrot.slane %v181_v38, 1 }
  0xf8   :  { %v183_v44 = vmin.f32 %v181_v38, %v182_v39 }
  0xfa   :  { %vm186_vm3 = vcmp.eq.f32.partialorder %v124_v13, %v183_v44  ;;  %vm187_vm4 = vcmp.eq.f32.partialorder %v452_v12, %v183_v44  ;;  %vm190_vm5 = vcmp.eq.f32.partialorder %v144_v26, %v183_v44  ;;  %vm191_vm6 = vcmp.eq.f32.partialorder %v458_v22, %v183_v44 }
  0xfb   :  { %v194_v48 = vsel %vm186_vm3, %v564_v40, 64  ;;  %v195_v49 = vsel %vm187_vm4, %v567_v41, 64  ;;  %v198_v50 = vsel %vm190_vm5, %v570_v42, 64  ;;  %v199_v51 = vsel %vm191_vm6, %v573_v43, 64 }
  0xfc   :  { %v202_v52 = vsel %vm162_vm2, %v194_v48, 2147483647  ;;  %v203_v53 = vsel %vm162_vm2, %v195_v49, 2147483647  ;;  %v210_v54 = vsel %vm162_vm2, %v198_v50, 2147483647  ;;  %vm184_vm7 = vcmp.eq.f32.partialorder %v114_v11, %v183_v44 }
  0xfd   :  { %vm211_vm8 = vcmp.lt.s32.totalorder %v202_v52, %v210_v54  ;;  %v213_v55 = vsel %vm162_vm2, %v199_v51, 2147483647  ;;  %vm185_vm9 = vcmp.eq.f32.partialorder %v449_v10, %v183_v44  ;;  %vm188_vm10 = vcmp.eq.f32.partialorder %v134_v17, %v183_v44  ;;  %v276_v17 = vpop.trf.xlu0 }
  0xfe   :  { %v212_v56 = vsel %vm211_vm8, %v202_v52, %v210_v54  ;;  %vm214_vm11 = vcmp.lt.s32.totalorder %v203_v53, %v213_v55  ;;  %vm189_vm12 = vcmp.eq.f32.partialorder %v455_v14, %v183_v44  ;;  %v192_v57 = vsel %vm184_vm7, %v561_v37, 64 }
  0xff   :  { %v215_v58 = vsel %vm214_vm11, %v203_v53, %v213_v55  ;;  %v193_v59 = vsel %vm185_vm9, %v155_v45, 64  ;;  %v196_v60 = vsel %vm188_vm10, %v577_v46, 64  ;;  %v197_v61 = vsel %vm189_vm12, %v580_v47, 64 }
 0x100   :  { %vm218_vm13 = vcmp.lt.s32.totalorder %v212_v56, %v215_v58  ;;  %v200_v62 = vsel %vm162_vm2, %v192_v57, 2147483647  ;;  %v201_v63 = vsel %vm162_vm2, %v193_v59, 2147483647  ;;  %v204_v0 = vsel %vm162_vm2, %v196_v60, 2147483647 }
 0x101   :  { %v219_v1 = vsel %vm218_vm13, %v212_v56, %v215_v58  ;;  %vm205_vm14 = vcmp.lt.s32.totalorder %v200_v62, %v204_v0  ;;  %v207_v2 = vsel %vm162_vm2, %v197_v61, 2147483647  ;;  %vm231_vm7 = vcmp.lt.f32.partialorder %v183_v44, inf }
 0x102   :  { %v206_v3 = vsel %vm205_vm14, %v200_v62, %v204_v0  ;;  %vm208_vm15 = vcmp.lt.s32.totalorder %v201_v63, %v207_v2  ;;  %v499_v14 = vmov 1.0|1.0  }
 0x103   :  { %v209_v4 = vsel %vm208_vm15, %v201_v63, %v207_v2 }
 0x104   :  { %vm216_vm0 = vcmp.lt.s32.totalorder %v206_v3, %v209_v4 }
 0x105   :  { %v217_v5 = vsel %vm216_vm0, %v206_v3, %v209_v4 }
 0x106   :  { %vm220_vm3 = vcmp.lt.s32.totalorder %v217_v5, %v219_v1 }
 0x107   :  { %v221_v6 = vsel %vm220_vm3, %v217_v5, %v219_v1 }
 0x108   :  { %v222_v7 = vrot.slane %v221_v6, 4 }
 0x10a   :  { %vm223_vm4 = vcmp.lt.s32.totalorder %v221_v6, %v222_v7 }
 0x10b   :  { %v224_v8 = vsel %vm223_vm4, %v221_v6, %v222_v7 }
 0x10c   :  { %v225_v9 = vrot.slane %v224_v8, 2 }
 0x10e   :  { %vm226_vm5 = vcmp.lt.s32.totalorder %v224_v8, %v225_v9 }
 0x10f   :  { %v227_v10 = vsel %vm226_vm5, %v224_v8, %v225_v9 }
 0x110   :  { %v228_v11 = vrot.slane %v227_v10, 1 }
 0x112   :  { %vm229_vm6 = vcmp.lt.s32.totalorder %v227_v10, %v228_v11 }
 0x113   :  { %v230_v12 = vsel %vm229_vm6, %v227_v10, %v228_v11 }
 0x114   :  { %v232_v13 = vsel %vm231_vm7, %v230_v12, 0 }
 0x115   :  { %vm233_vm8 = vcmp.eq.s32.totalorder %v561_v37, %v232_v13  ;;  %vm234_vm9 = vcmp.eq.s32.totalorder %v155_v45, %v232_v13  ;;  %vm235_vm10 = vcmp.eq.s32.totalorder %v564_v40, %v232_v13  ;;  %vm236_vm11 = vcmp.eq.s32.totalorder %v567_v41, %v232_v13 }
 0x116   :  { %vm481_vm12 = vmpackc.low %vm234_vm9, %vm233_vm8  ;;  %vm237_vm14 = vcmp.eq.s32.totalorder %v577_v46, %v232_v13  ;;  %vm238_vm15 = vcmp.eq.s32.totalorder %v580_v47, %v232_v13  ;;  %vm239_vm3 = vcmp.eq.s32.totalorder %v570_v42, %v232_v13  ;;  %vm240_vm4 = vcmp.eq.s32.totalorder %v573_v43, %v232_v13 }
 0x117   :  { %482 = vmatprep.subr.msk.bf16.mxu1 %vm481_vm12, %v499_v14  ;;  %vm485_vm13 = vmpackc.low %vm236_vm11, %vm235_vm10 }
 0x118   :  { %484 = vmatpush3.bf16.msk.msra.mxu1 %vm481_vm12, %v499_v14  ;;  %vm489_vm0 = vmpackc.low %vm238_vm15, %vm237_vm14 }
 0x119   :  { %486 = vmatprep.subr.msk.bf16.mxu1 %vm485_vm13, %v499_v14  ;;  %vm493_vm5 = vmpackc.low %vm240_vm4, %vm239_vm3 }
 0x11c   :  { %488 = vmatpush3.bf16.msk.msra.mxu1 %vm485_vm13, %v499_v14 }
 0x11d   :  { %490 = vmatprep.subr.msk.bf16.mxu1 %vm489_vm0, %v499_v14 }
 0x120   :  { %492 = vmatpush3.bf16.msk.msra.mxu1 %vm489_vm0, %v499_v14 }
 0x121   :  { %494 = vmatprep.subr.msk.bf16.mxu1 %vm493_vm5, %v499_v14 }
 0x124   :  { %496 = vmatpush3.bf16.msk.msra.mxu1 %vm493_vm5, %v499_v14 }
 0x127   :  { %476 = vmatmul.mubr.msk.f32.vlgmr.msra.gmra.mrb[0].mxu1 %vm289_vm1, %v274_v15 }
 0x128   :  { %478 = vmatprep.mubr.msk.f32.mxu1 %vm289_vm1, %v275_v16 }
 0x12b   :  { %479 = vmatmul.mubr.msk.f32.gmra.mrb[2].mxu1 %vm289_vm1, %v276_v17 }
 0x1fa   :  { %v477_v18 = vpop.f32.mrb[0].mxu1 }
 0x1fb   :  { %388 = vst.msk [vmem:[%s625_s2 + $0x8] sm:$0xff] %vm162_vm2, %v477_v18  ;;  %v368_v19 = vpop.f32.mrb[1].mxu1 }
 0x1fc   :  { %387 = vst.msk [vmem:[%s625_s2] sm:$0xff] %vm162_vm2, %v368_v19 }
 0x1fe   :  { %v480_v20 = vpop.f32.mrb[2].mxu1 }
 0x1ff   :  { %390 = vst.msk [vmem:[%s625_s2 + $0x18] sm:$0xff] %vm162_vm2, %v480_v20  ;;  %v378_v21 = vpop.f32.mrb[3].mxu1 }
 0x200   :  { %389 = vst.msk [vmem:[%s625_s2 + $0x10] sm:$0xff] %vm162_vm2, %v378_v21 }

// kernel: tpu_custom_call.1
= control target key start
LH: loop header
LB: loop body
LE: loop exit
PB: predicated region body
PF: predicated region fallthrough
CT: control target
= control target key end

     0   :  { %vm20_vm0 = vcmask 261120   ;;  %vm289_vm1 = vcmask 523264   ;;  %vm162_vm2 = vcmask 64512   ;;  %v153_v34 = vlaneseq  ;;  %s623_s0 = inlined_call_operand.vmem [shape: f32[8,32], index: 0, kind: input, shape index: {}]   ;;  %s624_s1 = inlined_call_operand.vmem [shape: f32[64,32], index: 1, kind: input, shape index: {}]   ;;  %s625_s2 = inlined_call_operand.vmem [shape: f32[32,8], index: 2, kind: output, shape index: {}]  }
   0x1   :  { %v11_v0 = vld [vmem:[%s623_s0] sm:$0xff]  ;;  %v13_v2 = vld [vmem:[%s624_s1 + $0x8] sm:$0xff]  ;;  %v14_v3 = vld [vmem:[%s624_s1 + $0x10] sm:$0xff] }
   0x2   :  { %v12_v1 = vld [vmem:[%s624_s1] sm:$0xff]  ;;  %445 = vmatprep.subr.msk.mxu0 %vm20_vm0, %v11_v0  ;;  %v15_v4 = vld [vmem:[%s624_s1 + $0x18] sm:$0xff]  ;;  %v17_v6 = vld [vmem:[%s624_s1 + $0x28] sm:$0xff]  ;;  %v561_v37 = vshrl.u32 %v153_v34, 7 }
   0x3   :  { %447 = vmatprep.mubr.msk.f32.mxu0 %vm20_vm0, %v12_v1  ;;  %446 = vmatpush3.xpose.msk.msra.mxu0 %vm20_vm0, %v11_v0  ;;  %v16_v5 = vld [vmem:[%s624_s1 + $0x20] sm:$0xff]  ;;  %v18_v7 = vld [vmem:[%s624_s1 + $0x30] sm:$0xff]  ;;  %v19_v8 = vld [vmem:[%s624_s1 + $0x38] sm:$0xff] }
   0x4   :  { %257 = vxpose.xlu0.b32.start [1/8] (short) (narrow) %v12_v1, 32  ;;  %v564_v40 = vadd.s32 16, %v561_v37  ;;  %v567_v41 = vadd.s32 24, %v561_v37  ;;  %v570_v42 = vadd.s32 48, %v561_v37  ;;  %v573_v43 = vadd.s32 56, %v561_v37 }
   0x5   :  { %v155_v45 = vadd.s32 8, %v561_v37  ;;  %v577_v46 = vadd.s32 32, %v561_v37  ;;  %v580_v47 = vadd.s32 40, %v561_v37 }
   0x6   :  { %448 = vmatmul.mubr.msk.f32.vlgmr.msra.gmra.mrb[0].mxu0 %vm20_vm0, %v13_v2 }
   0x7   :  { %450 = vmatprep.mubr.msk.f32.mxu0 %vm20_vm0, %v14_v3 }
   0x8   :  { %258 = vxpose.xlu0.b32.cont [2/8] (short) (narrow) %v13_v2, 32 }
   0xa   :  { %451 = vmatmul.mubr.msk.f32.gmra.mrb[2].mxu0 %vm20_vm0, %v15_v4 }
   0xb   :  { %453 = vmatprep.mubr.msk.f32.mxu0 %vm20_vm0, %v16_v5 }
   0xc   :  { %259 = vxpose.xlu0.b32.cont [3/8] (short) (narrow) %v14_v3, 32 }
   0xe   :  { %454 = vmatmul.mubr.msk.f32.gmra.mrb[4].mxu0 %vm20_vm0, %v17_v6 }
   0xf   :  { %456 = vmatprep.mubr.msk.f32.mxu0 %vm20_vm0, %v18_v7 }
  0x10   :  { %260 = vxpose.xlu0.b32.cont [4/8] (short) (narrow) %v15_v4, 32 }
  0x12   :  { %457 = vmatmul.mubr.msk.f32.gmra.mrb[6].mxu0 %vm20_vm0, %v19_v8 }
  0x14   :  { %261 = vxpose.xlu0.b32.cont [5/8] (short) (narrow) %v16_v5, 32 }
  0x18   :  { %262 = vxpose.xlu0.b32.cont [6/8] (short) (narrow) %v17_v6, 32 }
  0x1c   :  { %263 = vxpose.xlu0.b32.cont [7/8] (short) (narrow) %v18_v7, 32 }
  0x20   :  { %264 = vxpose.xlu0.b32.end [8/8] (short) (narrow) %v19_v8, 32 }
  0x84   :  { %v273_v9 = vpop.trf.xlu0 }
  0x85   :  { %475 = vmatprep.mubr.msk.f32.mxu1 %vm289_vm1, %v273_v9 }
  0xd9   :  { %v449_v10 = vpop.f32.mrb[0].mxu0 }
  0xda   :  { %v114_v11 = vpop.f32.mrb[1].mxu0  ;;  %v164_v15 = vsel %vm162_vm2, %v449_v10, inf }
  0xdb   :  { %v163_v18 = vsel %vm162_vm2, %v114_v11, inf }
  0xdd   :  { %v452_v12 = vpop.f32.mrb[2].mxu0 }
  0xde   :  { %v124_v13 = vpop.f32.mrb[3].mxu0  ;;  %v166_v23 = vsel %vm162_vm2, %v452_v12, inf }
  0xdf   :  { %v165_v27 = vsel %vm162_vm2, %v124_v13, inf }
  0xe1   :  { %v455_v14 = vpop.f32.mrb[4].mxu0 }
  0xe2   :  { %v169_v16 = vsel %vm162_vm2, %v455_v14, inf  ;;  %v134_v17 = vpop.f32.mrb[5].mxu0 }
  0xe3   :  { %v170_v19 = vmin.f32 %v164_v15, %v169_v16  ;;  %v167_v20 = vsel %vm162_vm2, %v134_v17, inf  ;;  %v274_v15 = vpop.trf.xlu0 }
  0xe4   :  { %v168_v21 = vmin.f32 %v163_v18, %v167_v20 }
  0xe5   :  { %v458_v22 = vpop.f32.mrb[6].mxu0 }
  0xe6   :  { %v175_v24 = vmin.f32 %v168_v21, %v170_v19  ;;  %v173_v25 = vsel %vm162_vm2, %v458_v22, inf  ;;  %v144_v26 = vpop.f32.mrb[7].mxu0 }
  0xe7   :  { %v174_v28 = vmin.f32 %v166_v23, %v173_v25  ;;  %v171_v29 = vsel %vm162_vm2, %v144_v26, inf  ;;  %v275_v16 = vpop.trf.xlu0 }
  0xe8   :  { %v172_v30 = vmin.f32 %v165_v27, %v171_v29 }
  0xea   :  { %v176_v31 = vmin.f32 %v172_v30, %v174_v28 }
  0xec   :  { %v177_v32 = vmin.f32 %v175_v24, %v176_v31 }
  0xee   :  { %v178_v33 = vrot.slane %v177_v32, 4 }
  0xf0   :  { %v179_v35 = vmin.f32 %v177_v32, %v178_v33 }
  0xf2   :  { %v180_v36 = vrot.slane %v179_v35, 2 }
  0xf4   :  { %v181_v38 = vmin.f32 %v179_v35, %v180_v36 }
  0xf6   :  { %v182_v39 = vrot.slane %v181_v38, 1 }
  0xf8   :  { %v183_v44 = vmin.f32 %v181_v38, %v182_v39 }
  0xfa   :  { %vm186_vm3 = vcmp.eq.f32.partialorder %v124_v13, %v183_v44  ;;  %vm187_vm4 = vcmp.eq.f32.partialorder %v452_v12, %v183_v44  ;;  %vm190_vm5 = vcmp.eq.f32.partialorder %v144_v26, %v183_v44  ;;  %vm191_vm6 = vcmp.eq.f32.partialorder %v458_v22, %v183_v44 }
  0xfb   :  { %v194_v48 = vsel %vm186_vm3, %v564_v40, 64  ;;  %v195_v49 = vsel %vm187_vm4, %v567_v41, 64  ;;  %v198_v50 = vsel %vm190_vm5, %v570_v42, 64  ;;  %v199_v51 = vsel %vm191_vm6, %v573_v43, 64 }
  0xfc   :  { %v202_v52 = vsel %vm162_vm2, %v194_v48, 2147483647  ;;  %v203_v53 = vsel %vm162_vm2, %v195_v49, 2147483647  ;;  %v210_v54 = vsel %vm162_vm2, %v198_v50, 2147483647  ;;  %vm184_vm7 = vcmp.eq.f32.partialorder %v114_v11, %v183_v44 }
  0xfd   :  { %vm211_vm8 = vcmp.lt.s32.totalorder %v202_v52, %v210_v54  ;;  %v213_v55 = vsel %vm162_vm2, %v199_v51, 2147483647  ;;  %vm185_vm9 = vcmp.eq.f32.partialorder %v449_v10, %v183_v44  ;;  %vm188_vm10 = vcmp.eq.f32.partialorder %v134_v17, %v183_v44  ;;  %v276_v17 = vpop.trf.xlu0 }
  0xfe   :  { %v212_v56 = vsel %vm211_vm8, %v202_v52, %v210_v54  ;;  %vm214_vm11 = vcmp.lt.s32.totalorder %v203_v53, %v213_v55  ;;  %vm189_vm12 = vcmp.eq.f32.partialorder %v455_v14, %v183_v44  ;;  %v192_v57 = vsel %vm184_vm7, %v561_v37, 64 }
  0xff   :  { %v215_v58 = vsel %vm214_vm11, %v203_v53, %v213_v55  ;;  %v193_v59 = vsel %vm185_vm9, %v155_v45, 64  ;;  %v196_v60 = vsel %vm188_vm10, %v577_v46, 64  ;;  %v197_v61 = vsel %vm189_vm12, %v580_v47, 64 }
 0x100   :  { %vm218_vm13 = vcmp.lt.s32.totalorder %v212_v56, %v215_v58  ;;  %v200_v62 = vsel %vm162_vm2, %v192_v57, 2147483647  ;;  %v201_v63 = vsel %vm162_vm2, %v193_v59, 2147483647  ;;  %v204_v0 = vsel %vm162_vm2, %v196_v60, 2147483647 }
 0x101   :  { %v219_v1 = vsel %vm218_vm13, %v212_v56, %v215_v58  ;;  %vm205_vm14 = vcmp.lt.s32.totalorder %v200_v62, %v204_v0  ;;  %v207_v2 = vsel %vm162_vm2, %v197_v61, 2147483647  ;;  %vm231_vm7 = vcmp.lt.f32.partialorder %v183_v44, inf }
 0x102   :  { %v206_v3 = vsel %vm205_vm14, %v200_v62, %v204_v0  ;;  %vm208_vm15 = vcmp.lt.s32.totalorder %v201_v63, %v207_v2  ;;  %v499_v14 = vmov 1.0|1.0  }
 0x103   :  { %v209_v4 = vsel %vm208_vm15, %v201_v63, %v207_v2 }
 0x104   :  { %vm216_vm0 = vcmp.lt.s32.totalorder %v206_v3, %v209_v4 }
 0x105   :  { %v217_v5 = vsel %vm216_vm0, %v206_v3, %v209_v4 }
 0x106   :  { %vm220_vm3 = vcmp.lt.s32.totalorder %v217_v5, %v219_v1 }
 0x107   :  { %v221_v6 = vsel %vm220_vm3, %v217_v5, %v219_v1 }
 0x108   :  { %v222_v7 = vrot.slane %v221_v6, 4 }
 0x10a   :  { %vm223_vm4 = vcmp.lt.s32.totalorder %v221_v6, %v222_v7 }
 0x10b   :  { %v224_v8 = vsel %vm223_vm4, %v221_v6, %v222_v7 }
 0x10c   :  { %v225_v9 = vrot.slane %v224_v8, 2 }
 0x10e   :  { %vm226_vm5 = vcmp.lt.s32.totalorder %v224_v8, %v225_v9 }
 0x10f   :  { %v227_v10 = vsel %vm226_vm5, %v224_v8, %v225_v9 }
 0x110   :  { %v228_v11 = vrot.slane %v227_v10, 1 }
 0x112   :  { %vm229_vm6 = vcmp.lt.s32.totalorder %v227_v10, %v228_v11 }
 0x113   :  { %v230_v12 = vsel %vm229_vm6, %v227_v10, %v228_v11 }
 0x114   :  { %v232_v13 = vsel %vm231_vm7, %v230_v12, 0 }
 0x115   :  { %vm233_vm8 = vcmp.eq.s32.totalorder %v561_v37, %v232_v13  ;;  %vm234_vm9 = vcmp.eq.s32.totalorder %v155_v45, %v232_v13  ;;  %vm235_vm10 = vcmp.eq.s32.totalorder %v564_v40, %v232_v13  ;;  %vm236_vm11 = vcmp.eq.s32.totalorder %v567_v41, %v232_v13 }
 0x116   :  { %vm481_vm12 = vmpackc.low %vm234_vm9, %vm233_vm8  ;;  %vm237_vm14 = vcmp.eq.s32.totalorder %v577_v46, %v232_v13  ;;  %vm238_vm15 = vcmp.eq.s32.totalorder %v580_v47, %v232_v13  ;;  %vm239_vm3 = vcmp.eq.s32.totalorder %v570_v42, %v232_v13  ;;  %vm240_vm4 = vcmp.eq.s32.totalorder %v573_v43, %v232_v13 }
 0x117   :  { %482 = vmatprep.subr.msk.bf16.mxu1 %vm481_vm12, %v499_v14  ;;  %vm485_vm13 = vmpackc.low %vm236_vm11, %vm235_vm10 }
 0x118   :  { %484 = vmatpush3.bf16.msk.msra.mxu1 %vm481_vm12, %v499_v14  ;;  %vm489_vm0 = vmpackc.low %vm238_vm15, %vm237_vm14 }
 0x119   :  { %486 = vmatprep.subr.msk.bf16.mxu1 %vm485_vm13, %v499_v14  ;;  %vm493_vm5 = vmpackc.low %vm240_vm4, %vm239_vm3 }
 0x11c   :  { %488 = vmatpush3.bf16.msk.msra.mxu1 %vm485_vm13, %v499_v14 }
 0x11d   :  { %490 = vmatprep.subr.msk.bf16.mxu1 %vm489_vm0, %v499_v14 }
 0x120   :  { %492 = vmatpush3.bf16.msk.msra.mxu1 %vm489_vm0, %v499_v14 }
 0x121   :  { %494 = vmatprep.subr.msk.bf16.mxu1 %vm493_vm5, %v499_v14 }
 0x124   :  { %496 = vmatpush3.bf16.msk.msra.mxu1 %vm493_vm5, %v499_v14 }
 0x127   :  { %476 = vmatmul.mubr.msk.f32.vlgmr.msra.gmra.mrb[0].mxu1 %vm289_vm1, %v274_v15 }
 0x128   :  { %478 = vmatprep.mubr.msk.f32.mxu1 %vm289_vm1, %v275_v16 }
 0x12b   :  { %479 = vmatmul.mubr.msk.f32.gmra.mrb[2].mxu1 %vm289_vm1, %v276_v17 }
 0x1fa   :  { %v477_v18 = vpop.f32.mrb[0].mxu1 }
 0x1fb   :  { %388 = vst.msk [vmem:[%s625_s2 + $0x8] sm:$0xff] %vm162_vm2, %v477_v18  ;;  %v368_v19 = vpop.f32.mrb[1].mxu1 }
 0x1fc   :  { %387 = vst.msk [vmem:[%s625_s2] sm:$0xff] %vm162_vm2, %v368_v19 }
 0x1fe   :  { %v480_v20 = vpop.f32.mrb[2].mxu1 }
 0x1ff   :  { %390 = vst.msk [vmem:[%s625_s2 + $0x18] sm:$0xff] %vm162_vm2, %v480_v20  ;;  %v378_v21 = vpop.f32.mrb[3].mxu1 }
 0x200   :  { %389 = vst.msk [vmem:[%s625_s2 + $0x10] sm:$0xff] %vm162_vm2, %v378_v21 }

</bundles_post_ra>
